<compile_context>
chip_gen: v5e
topology: v5e:2x2
jax: 0.10.0
libtpu: 0.0.40
codegen_flags: <defaults>
</compile_context>

<pallas_src>
import functools

import jax
import jax.numpy as jnp
from jax.experimental import pallas as pl
from jax.experimental.pallas import tpu as pltpu

NEG_SLOPE = 0.01  # PyTorch nn.LeakyReLU default


def _leaky_relu(x):
    return jnp.where(x >= 0, x, NEG_SLOPE * x)


def bot_classifier_kernel(x_ref, w1_ref, b1_ref, w2t_ref, b2_ref, out_ref,
                          acc_ref, *, rem_k, compute_dtype):
    k = pl.program_id(1)
    nk = pl.num_programs(1)

    @pl.when(k == 0)
    def _():
        acc_ref[...] = jnp.zeros_like(acc_ref)

    x = x_ref[...]                                    # [TN, TK] (HBM dtype)
    w1 = w1_ref[...]                                  # [TK, H]
    if rem_k:
        # Last K block is partially out of bounds: zero the garbage x lanes AND
        # the garbage w1 rows (OOB garbage could be NaN/Inf; 0*NaN would poison
        # the accumulator).  Static no-op when input_dim % TK == 0.
        limit = jnp.where(k == nk - 1, rem_k, x.shape[1])
        lane = jax.lax.broadcasted_iota(jnp.int32, x.shape, 1)
        x = jnp.where(lane < limit, x, jnp.zeros_like(x))
        row = jax.lax.broadcasted_iota(jnp.int32, w1.shape, 0)
        w1 = jnp.where(row < limit, w1, jnp.zeros_like(w1))

    if x.dtype != compute_dtype:
        x = x.astype(compute_dtype)                   # in-kernel cast: no extra HBM pass

    # ---- hidden layer: Linear on the MXU, f32 accumulation ------------------
    acc_ref[...] += jnp.dot(x, w1, preferred_element_type=jnp.float32)

    @pl.when(k == nk - 1)
    def _():
        h = _leaky_relu(acc_ref[...] + b1_ref[...])                    # [TN, H] f32
        # ---- output layer (2 classes) on the VPU/XLU + LeakyReLU ------------
        # A [TN,H]x[H,2] MXU matmul would use 2/256 of the MXU; broadcast-mul +
        # lane reduce overlaps with the next tile's (real) matmul instead.
        z0 = jnp.sum(h * w2t_ref[0:1, :], axis=-1, keepdims=True) + b2_ref[0:1, 0:1]
        z1 = jnp.sum(h * w2t_ref[1:2, :], axis=-1, keepdims=True) + b2_ref[0:1, 1:2]
        z0 = _leaky_relu(z0)                                           # [TN, 1]
        z1 = _leaky_relu(z1)                                           # [TN, 1]
        # ---- 2-class softmax == per-class sigmoid of +/-(z1 - z0) -----------
        # softmax([z0, z1]) = [1/(1+e^{z1-z0}), 1/(1+e^{z0-z1})].  Each column
        # gets its own exp (EUP slot), so p0 is symmetric with p1 (no 1 - p1
        # cancellation) and there is no cross-lane max/sum over a 2-wide axis.
        d = z1 - z0                                                    # [TN, 1]
        col = jax.lax.broadcasted_iota(jnp.int32, (d.shape[0], 2), 1)  # [TN, 2]
        sgn = jnp.where(col == 0, 1.0, -1.0)
        out_ref[...] = (1.0 / (1.0 + jnp.exp(d * sgn))).astype(out_ref.dtype)


def _vmem_capacity_bytes():
    try:
        info = pltpu.get_tpu_info()
        cap = getattr(info, "vmem_capacity_bytes", None)
        if cap:
            return int(cap)
    except Exception:
        pass
    return 64 * 1024 * 1024                 # conservative fallback (v7x per-TC size)


def _plan_tiling(n_rows, d, h, x_itemsize, w_itemsize, *, block_rows=None, block_k=None):
    """Pick (TN, TK, num_k, rem_k, vmem_limit_bytes) from the per-generation VMEM."""
    capacity = _vmem_capacity_bytes()
    # Working budget: ~1/2 of a 64 MiB (v7x per-TC) part, ~3/4 of a 128 MiB part.
    budget = capacity // 2 if capacity <= 64 * 1024 * 1024 else (capacity * 3) // 4

    sub = max(8, 32 // x_itemsize)          # f32 -> 8-row, bf16 -> 16-row alignment

    # ---- input_dim (K) tiling: only when resident w1 would blow the budget ----
    if block_k is not None:
        tk = int(block_k)
    elif 2 * d * h * w_itemsize <= budget // 2:
        tk = d                              # common case: whole w1 stays resident
    else:
        # Stream w1 in ~2 MiB (TK, H) chunks; TK must be a multiple of 128.
        tk = max(128, ((2 * 1024 * 1024) // max(h * w_itemsize, 1)) // 128 * 128)
        tk = min(tk, ((d + 127) // 128) * 128)
    num_k = -(-d // tk)
    if num_k == 1:
        tk = d
    rem_k = d % tk if num_k > 1 else 0

    # ---- batch (N) tile: sized by bytes, not rows --------------------------
    fixed = 2 * tk * h * w_itemsize + 2 * (h * 4 + 2 * h * 4 + 2 * 4)   # w1/b1/w2t/b2 (x2 bufs)
    per_row = 2 * tk * x_itemsize + 2 * 2 * 4 + h * 4                   # x + out (x2 bufs) + f32 acc
    if block_rows is not None:
        tn = int(block_rows)
    else:
        n_aligned = ((n_rows + sub - 1) // sub) * sub
        tn_cap = max((budget - fixed) // per_row, sub)
        tn_target = max((4 * 1024 * 1024) // (tk * x_itemsize), sub)    # ~4 MiB of x per buffer
        tn = min(tn_cap, tn_target, n_aligned)
    tn = max((tn // sub) * sub, sub)

    vmem_need = fixed + tn * per_row
    vmem_limit = max(32 * 1024 * 1024, (vmem_need * 3) // 2 + (4 << 20))
    vmem_limit = min(vmem_limit, capacity - (2 << 20))
    return tn, tk, num_k, rem_k, vmem_limit


def bot_classifier(feature, w1, b1, w2, b2, *, block_rows=None, block_k=None,
                   compute_dtype=jnp.float32):
    """feature: [N, input_dim]; w1: [input_dim, hidden]; b1: [1, hidden] or [hidden];
    w2: [hidden, 2]; b2: [1, 2] or [2]  ->  [N, 2] softmax probabilities (f32).

    compute_dtype=jnp.bfloat16 halves the dominant HBM read on v6e/v7x when the
    caller stores `feature` in bf16 (the cast happens inside the kernel, never in
    the wrapper); the epilogue math always stays f32.
    """
    N, D = feature.shape
    H = w1.shape[1]
    O = w2.shape[1]
    assert O == 2, "BotClassifier output layer is 2-way"

    w1c = jnp.asarray(w1, compute_dtype)                    # resident weight, cast once
    w2t = jnp.asarray(w2, jnp.float32).T                    # [2, H] per-class lane rows
    b1f = jnp.asarray(b1, jnp.float32).reshape(1, H)
    b2f = jnp.asarray(b2, jnp.float32).reshape(1, O)

    x_item = jnp.dtype(feature.dtype).itemsize
    w_item = jnp.dtype(compute_dtype).itemsize
    tn, tk, num_k, rem_k, vmem_limit = _plan_tiling(
        N, D, H, x_item, w_item, block_rows=block_rows, block_k=block_k)

    grid = (int(pl.cdiv(N, tn)), num_k)

    cost = pl.CostEstimate(
        flops=2 * N * D * H + 4 * N * H + 12 * N,
        transcendentals=2 * N,
        bytes_accessed=N * D * x_item + D * H * w_item + (3 * H + O + N * O) * 4,
    )

    kernel = functools.partial(bot_classifier_kernel, rem_k=rem_k,
                               compute_dtype=compute_dtype)

    out = pl.pallas_call(
        kernel,
        out_shape=jax.ShapeDtypeStruct((N, O), jnp.float32),
        grid=grid,
        in_specs=[
            pl.BlockSpec((tn, tk), lambda i, k: (i, k)),    # x: tiled over batch (and K)
            pl.BlockSpec((tk, H), lambda i, k: (k, 0)),     # w1: resident unless K-tiled
            pl.BlockSpec((1, H), lambda i, k: (0, 0)),      # b1: resident
            pl.BlockSpec((O, H), lambda i, k: (0, 0)),      # w2^T: resident
            pl.BlockSpec((1, O), lambda i, k: (0, 0)),      # b2: resident
        ],
        out_specs=pl.BlockSpec((tn, O), lambda i, k: (i, 0)),
        scratch_shapes=[pltpu.VMEM((tn, H), jnp.float32)],  # hidden-layer accumulator
        compiler_params=pltpu.CompilerParams(
            dimension_semantics=("parallel", "arbitrary"),  # batch -> megacore; K is a reduction
            vmem_limit_bytes=int(vmem_limit),
        ),
        cost_estimate=cost,
    )(feature, w1c, b1f, w2t, b2f)
    return out


def init_params(key, input_dim, hidden_dim):
    """Deterministic init mimicking nn.Linear's uniform(-1/sqrt(fan_in), ...)."""
    k1, k2, k3, k4 = jax.random.split(key, 4)
    lim1 = 1.0 / (input_dim ** 0.5)
    lim2 = 1.0 / (hidden_dim ** 0.5)
    w1 = jax.random.uniform(k1, (input_dim, hidden_dim), jnp.float32, -lim1, lim1)
    b1 = jax.random.uniform(k2, (1, hidden_dim), jnp.float32, -lim1, lim1)
    w2 = jax.random.uniform(k3, (hidden_dim, 2), jnp.float32, -lim2, lim2)
    b2 = jax.random.uniform(k4, (1, 2), jnp.float32, -lim2, lim2)
    return w1, b1, w2, b2


def reference(feature, w1, b1, w2, b2):
    h = _leaky_relu(feature @ w1 + b1)
    z = _leaky_relu(h @ w2 + b2)
    return jax.nn.softmax(z, axis=-1)


if __name__ == "__main__":
    key = jax.random.PRNGKey(0)
    k_x1, k_p1, k_x2, k_p2, k_x3, k_p3 = jax.random.split(key, 6)

    # Case 1: small shapes consistent with the module; auto tiling, whole w1
    # resident, single grid step.
    N1, D1, H1 = 8, 32, 32
    feat1 = jax.random.normal(k_x1, (N1, D1), jnp.float32)
    params1 = init_params(k_p1, D1, H1)
    out1 = bot_classifier(feat1, *params1)
    jax.block_until_ready(out1)
    ref1 = reference(feat1, *params1)
    assert out1.shape == (N1, 2)
    assert jnp.allclose(out1, ref1, atol=1e-4, rtol=1e-4), "case 1 mismatch"

    # Case 2: batch not a multiple of the tile -> exercises the un-padded edge
    # batch block (garbage rows computed, OOB output writes discarded) on a
    # multi-step, pipelined, "parallel" grid.
    N2, D2, H2 = 200, 64, 32
    feat2 = jax.random.normal(k_x2, (N2, D2), jnp.float32)
    params2 = init_params(k_p2, D2, H2)
    out2 = bot_classifier(feat2, *params2, block_rows=64)
    jax.block_until_ready(out2)
    ref2 = reference(feat2, *params2)
    assert out2.shape == (N2, 2)
    assert jnp.allclose(out2, ref2, atol=1e-4, rtol=1e-4), "case 2 mismatch"

    # Case 3: forced K-tiling (the large-input_dim fallback) with a ragged K
    # remainder -> exercises the accumulator scratch + in-kernel K-edge masking.
    N3, D3, H3 = 64, 160, 32
    feat3 = jax.random.normal(k_x3, (N3, D3), jnp.float32)
    params3 = init_params(k_p3, D3, H3)
    out3 = bot_classifier(feat3, *params3, block_rows=32, block_k=128)
    jax.block_until_ready(out3)
    ref3 = reference(feat3, *params3)
    assert out3.shape == (N3, 2)
    assert jnp.allclose(out3, ref3, atol=1e-4, rtol=1e-4), "case 3 mismatch"

    print("KERNEL_OK")
</pallas_src>

<mosaic_0001>
module attributes {stable_mosaic.version = 11 : i64} {
  func.func @bot_classifier_kernel(%arg0: i32, %arg1: i32, %arg2: memref<8x32xf32, #tpu.memory_space<vmem>>, %arg3: memref<32x32xf32, #tpu.memory_space<vmem>>, %arg4: memref<1x32xf32, #tpu.memory_space<vmem>>, %arg5: memref<2x32xf32, #tpu.memory_space<vmem>>, %arg6: memref<1x2xf32, #tpu.memory_space<vmem>>, %arg7: memref<8x2xf32, #tpu.memory_space<vmem>>, %arg8: memref<8x32xf32, #tpu.memory_space<vmem>>) attributes {dimension_semantics = [#tpu.dimension_semantics<parallel>, #tpu.dimension_semantics<arbitrary>], iteration_bounds = array<i64: 1, 1>, scalar_prefetch = 0 : i64, scratch_operands = 1 : i64, tpu.core_type = #tpu.core_type<tc>, window_params = [{transform_indices = @transform_0, window_bounds = array<i64: 8, 32>}, {transform_indices = @transform_1, window_bounds = array<i64: 32, 32>}, {pipeline_mode = #tpu.pipeline_mode<synchronous>, transform_indices = @transform_2, window_bounds = array<i64: 1, 32>}, {pipeline_mode = #tpu.pipeline_mode<synchronous>, transform_indices = @transform_3, window_bounds = array<i64: 2, 32>}, {pipeline_mode = #tpu.pipeline_mode<synchronous>, transform_indices = @transform_4, window_bounds = array<i64: 1, 2>}, {transform_indices = @transform_5, window_bounds = array<i64: 8, 2>}]} {
    %c0_i32 = arith.constant 0 : i32
    %0 = arith.cmpi eq, %arg1, %c0_i32 : i32
    %1 = arith.extui %0 : i1 to i32
    %c0_i32_0 = arith.constant 0 : i32
    %2 = arith.cmpi ne, %1, %c0_i32_0 : i32
    scf.if %2 {
      %cst_10 = arith.constant 0.000000e+00 : f32
      %12 = vector.broadcast %cst_10 : f32 to vector<8x32xf32>
      %c0_11 = arith.constant 0 : index
      %c0_12 = arith.constant 0 : index
      %13 = vector.load %arg8[%c0_11, %c0_12] : memref<8x32xf32, #tpu.memory_space<vmem>>, vector<8x32xf32>
      tpu.vector_store %arg8[%c0_11, %c0_12], %12 {strides = array<i32>} : memref<8x32xf32, #tpu.memory_space<vmem>>, vector<8x32xf32>,
    } else {
    }
    %c0 = arith.constant 0 : index
    %c0_1 = arith.constant 0 : index
    %3 = vector.load %arg2[%c0, %c0_1] : memref<8x32xf32, #tpu.memory_space<vmem>>, vector<8x32xf32>
    %c0_2 = arith.constant 0 : index
    %c0_3 = arith.constant 0 : index
    %4 = vector.load %arg3[%c0_2, %c0_3] : memref<32x32xf32, #tpu.memory_space<vmem>>, vector<32x32xf32>
    %c0_4 = arith.constant 0 : index
    %c0_5 = arith.constant 0 : index
    %5 = vector.load %arg8[%c0_4, %c0_5] : memref<8x32xf32, #tpu.memory_space<vmem>>, vector<8x32xf32>
    %cst = arith.constant dense<0.000000e+00> : vector<8x32xf32>
    %6 = tpu.matmul %3, %4, %cst {dimension_numbers = #tpu.dot_dimension_numbers<[1], [0], [0], [1], [0, 0, 1, 1], [], []>} : vector<8x32xf32>, vector<32x32xf32>, vector<8x32xf32> -> vector<8x32xf32>
    %7 = arith.addf %5, %6 : vector<8x32xf32>
    %c0_6 = arith.constant 0 : index
    %c0_7 = arith.constant 0 : index
    %8 = vector.load %arg8[%c0_6, %c0_7] : memref<8x32xf32, #tpu.memory_space<vmem>>, vector<8x32xf32>
    tpu.vector_store %arg8[%c0_6, %c0_7], %7 {strides = array<i32>} : memref<8x32xf32, #tpu.memory_space<vmem>>, vector<8x32xf32>,
    %c0_i32_8 = arith.constant 0 : i32
    %9 = arith.cmpi eq, %arg1, %c0_i32_8 : i32
    %10 = arith.extui %9 : i1 to i32
    %c0_i32_9 = arith.constant 0 : i32
    %11 = arith.cmpi ne, %10, %c0_i32_9 : i32
    scf.if %11 {
      %c0_10 = arith.constant 0 : index
      %c0_11 = arith.constant 0 : index
      %12 = vector.load %arg8[%c0_10, %c0_11] : memref<8x32xf32, #tpu.memory_space<vmem>>, vector<8x32xf32>
      %c0_12 = arith.constant 0 : index
      %c0_13 = arith.constant 0 : index
      %13 = vector.load %arg4[%c0_12, %c0_13] : memref<1x32xf32, #tpu.memory_space<vmem>>, vector<1x32xf32>
      %14 = vector.broadcast %13 : vector<1x32xf32> to vector<8x32xf32>
      %15 = arith.addf %12, %14 : vector<8x32xf32>
      %cst_14 = arith.constant 0.000000e+00 : f32
      %16 = vector.broadcast %cst_14 : f32 to vector<8x32xf32>
      %17 = arith.cmpf oge, %15, %16 : vector<8x32xf32>
      %cst_15 = arith.constant 0.00999999977 : f32
      %18 = vector.broadcast %cst_15 : f32 to vector<8x32xf32>
      %19 = arith.mulf %18, %15 : vector<8x32xf32>
      %20 = arith.select %17, %15, %19 : vector<8x32xi1>, vector<8x32xf32>
      %c0_16 = arith.constant 0 : index
      %c0_17 = arith.constant 0 : index
      %21 = vector.load %arg5[%c0_16, %c0_17] : memref<2x32xf32, #tpu.memory_space<vmem>>, vector<1x32xf32>
      %22 = vector.broadcast %21 : vector<1x32xf32> to vector<8x32xf32>
      %23 = arith.mulf %20, %22 : vector<8x32xf32>
      %cst_18 = arith.constant dense<0.000000e+00> : vector<8xf32>
      %24 = vector.multi_reduction <add>, %23, %cst_18 [1] : vector<8x32xf32> to vector<8xf32>
      %25 = vector.shape_cast %24 : vector<8xf32> to vector<8x1xf32>
      %c0_19 = arith.constant 0 : index
      %c0_20 = arith.constant 0 : index
      %26 = vector.load %arg6[%c0_19, %c0_20] : memref<1x2xf32, #tpu.memory_space<vmem>>, vector<1x1xf32>
      %27 = vector.broadcast %26 : vector<1x1xf32> to vector<8x1xf32>
      %28 = arith.addf %25, %27 : vector<8x1xf32>
      %c1 = arith.constant 1 : index
      %c0_21 = arith.constant 0 : index
      %29 = vector.load %arg5[%c1, %c0_21] : memref<2x32xf32, #tpu.memory_space<vmem>>, vector<1x32xf32>
      %30 = vector.broadcast %29 : vector<1x32xf32> to vector<8x32xf32>
      %31 = arith.mulf %20, %30 : vector<8x32xf32>
      %cst_22 = arith.constant dense<0.000000e+00> : vector<8xf32>
      %32 = vector.multi_reduction <add>, %31, %cst_22 [1] : vector<8x32xf32> to vector<8xf32>
      %33 = vector.shape_cast %32 : vector<8xf32> to vector<8x1xf32>
      %c0_23 = arith.constant 0 : index
      %c1_24 = arith.constant 1 : index
      %34 = vector.load %arg6[%c0_23, %c1_24] : memref<1x2xf32, #tpu.memory_space<vmem>>, vector<1x1xf32>
      %35 = vector.broadcast %34 : vector<1x1xf32> to vector<8x1xf32>
      %36 = arith.addf %33, %35 : vector<8x1xf32>
      %cst_25 = arith.constant 0.000000e+00 : f32
      %37 = vector.broadcast %cst_25 : f32 to vector<8x1xf32>
      %38 = arith.cmpf oge, %28, %37 : vector<8x1xf32>
      %cst_26 = arith.constant 0.00999999977 : f32
      %39 = vector.broadcast %cst_26 : f32 to vector<8x1xf32>
      %40 = arith.mulf %39, %28 : vector<8x1xf32>
      %41 = arith.select %38, %28, %40 : vector<8x1xi1>, vector<8x1xf32>
      %cst_27 = arith.constant 0.000000e+00 : f32
      %42 = vector.broadcast %cst_27 : f32 to vector<8x1xf32>
      %43 = arith.cmpf oge, %36, %42 : vector<8x1xf32>
      %cst_28 = arith.constant 0.00999999977 : f32
      %44 = vector.broadcast %cst_28 : f32 to vector<8x1xf32>
      %45 = arith.mulf %44, %36 : vector<8x1xf32>
      %46 = arith.select %43, %36, %45 : vector<8x1xi1>, vector<8x1xf32>
      %47 = arith.subf %46, %41 : vector<8x1xf32>
      %48 = tpu.iota {dimensions = array<i32: 1>} : vector<8x2xi32>
      %c0_i32_29 = arith.constant 0 : i32
      %49 = vector.broadcast %c0_i32_29 : i32 to vector<8x2xi32>
      %50 = arith.cmpi eq, %48, %49 : vector<8x2xi32>
      %cst_30 = arith.constant 1.000000e+00 : f32
      %cst_31 = arith.constant -1.000000e+00 : f32
      %51 = vector.broadcast %cst_30 : f32 to vector<8x2xf32>
      %52 = vector.broadcast %cst_31 : f32 to vector<8x2xf32>
      %53 = arith.select %50, %51, %52 : vector<8x2xi1>, vector<8x2xf32>
      %54 = vector.broadcast %47 : vector<8x1xf32> to vector<8x2xf32>
      %55 = arith.mulf %54, %53 : vector<8x2xf32>
      %56 = math.exp %55 : vector<8x2xf32>
      %cst_32 = arith.constant 1.000000e+00 : f32
      %57 = vector.broadcast %cst_32 : f32 to vector<8x2xf32>
      %58 = arith.addf %57, %56 : vector<8x2xf32>
      %cst_33 = arith.constant 1.000000e+00 : f32
      %59 = vector.broadcast %cst_33 : f32 to vector<8x2xf32>
      %60 = arith.divf %59, %58 : vector<8x2xf32>
      %c0_34 = arith.constant 0 : index
      %c0_35 = arith.constant 0 : index
      %61 = vector.load %arg7[%c0_34, %c0_35] : memref<8x2xf32, #tpu.memory_space<vmem>>, vector<8x2xf32>
      tpu.vector_store %arg7[%c0_34, %c0_35], %60 {strides = array<i32>} : memref<8x2xf32, #tpu.memory_space<vmem>>, vector<8x2xf32>,
    } else {
    }
    return
  }
  func.func @transform_0(%arg0: i32, %arg1: i32) -> (i32, i32) {
    %c0_i32 = arith.constant 0 : i32
    return %arg0, %arg1 : i32, i32
  }
  func.func @transform_1(%arg0: i32, %arg1: i32) -> (i32, i32) {
    %c0_i32 = arith.constant 0 : i32
    %c0_i32_0 = arith.constant 0 : i32
    return %arg1, %c0_i32 : i32, i32
  }
  func.func @transform_2(%arg0: i32, %arg1: i32) -> (i32, i32) {
    %c0_i32 = arith.constant 0 : i32
    %c0_i32_0 = arith.constant 0 : i32
    %c0_i32_1 = arith.constant 0 : i32
    return %c0_i32, %c0_i32_0 : i32, i32
  }
  func.func @transform_3(%arg0: i32, %arg1: i32) -> (i32, i32) {
    %c0_i32 = arith.constant 0 : i32
    %c0_i32_0 = arith.constant 0 : i32
    %c0_i32_1 = arith.constant 0 : i32
    return %c0_i32, %c0_i32_0 : i32, i32
  }
  func.func @transform_4(%arg0: i32, %arg1: i32) -> (i32, i32) {
    %c0_i32 = arith.constant 0 : i32
    %c0_i32_0 = arith.constant 0 : i32
    %c0_i32_1 = arith.constant 0 : i32
    return %c0_i32, %c0_i32_0 : i32, i32
  }
  func.func @transform_5(%arg0: i32, %arg1: i32) -> (i32, i32) {
    %c0_i32 = arith.constant 0 : i32
    %c0_i32_0 = arith.constant 0 : i32
    return %arg0, %c0_i32 : i32, i32
  }
}

</mosaic_0001>

<bundles_post_ra>
// kernel: tpu_custom_call.1
= control target key start
LH: loop header
LB: loop body
LE: loop exit
PB: predicated region body
PF: predicated region fallthrough
CT: control target
= control target key end

     0   :  { %10 = vsyncpa [#allocation4], 0  ;;  %s339_s0 = inlined_call_operand.hbm [shape: f32[8,32], index: 0, kind: input, shape index: {}]   ;;  %s340_s1 = inlined_call_operand.hbm [shape: f32[32,32], index: 1, kind: input, shape index: {}]   ;;  %s341_s2 = inlined_call_operand.hbm [shape: f32[1,32], index: 2, kind: input, shape index: {}]   ;;  %s342_s3 = inlined_call_operand.vmem [shape: f32[2,32], index: 3, kind: input, shape index: {}]   ;;  %s343_s4 = inlined_call_operand.vmem [shape: f32[1,2], index: 4, kind: input, shape index: {}]   ;;  %s344_s5 = inlined_call_operand.vmem [shape: f32[8,2], index: 5, kind: output, shape index: {}]  }
   0x1   :  { %11 = vsyncpa [#allocation6], 0  ;;  %s27_s20 = sshll.u32 %s340_s1, 4  ;;  %s274_s21 = smov [#allocation5]   ;;  %s28_s20 = int_to_ptr.hbm [resolvable:$true] %s27_s20 }
   0x2   :  { %s29_s22 = sshll.u32 %s274_s21, 4  ;;  %s17_s25 = sshll.u32 %s339_s0, 4  ;;  %s30_s22 = int_to_ptr.vmem [resolvable:$true] %s29_s22  ;;  %s18_s25 = int_to_ptr.hbm [resolvable:$true] %s17_s25 }
   0x3   :  { %s275_s26 = smov 128   ;;  %s276_s27 = smov 8  }
   0x4   :  { %35 = dma.hbm_to_vmem [thread:$0]  %s28_s20, 512, %s30_s22, [#allocation6], %s275_s26, %s275_s26, %s276_s27  }
   0x5   :  { %s277_s28 = smov [#allocation3]   ;;  %s41_s7 = sshll.u32 %s341_s2, 4  ;;  %s42_s7 = int_to_ptr.hbm [resolvable:$true] %s41_s7 }
   0x6   :  { %s19_s29 = sshll.u32 %s277_s28, 4  ;;  %s278_s1 = smov [#allocation7]   ;;  %s20_s29 = int_to_ptr.vmem [resolvable:$true] %s19_s29 }
   0x7   :  { %22 = dma.hbm_to_vmem [thread:$0]  %s18_s25, 128, %s20_s29, [#allocation4]  }
   0x8   :  { %s43_s8 = sshll.u32 %s278_s1, 4  ;;  %s44_s8 = int_to_ptr.vmem [resolvable:$true] %s43_s8 }
   0x9   :  { %46 = dma.hbm_to_vmem [thread:$0]  %s42_s7, 16, %s44_s8, [#allocation6]  }
   0xa   :  { %270 = dma.done.wait [#allocation4], 128  }
   0xb   :  { %271 = vsyncadd [#allocation4], 4294967168 }
   0xc   :  { %272 = dma.done.wait [#allocation6], 528  }
   0xd   :  { %273 = vsyncadd [#allocation6], 4294966768  ;;  %vm67_vm0 = vcmask 261120   ;;  %v279_v0 = vmov 0.0   ;;  %v73_v1 = vld [vmem:[#allocation5 + $0x18] sm:$0xff]  ;;  %v72_v2 = vld [vmem:[#allocation5 + $0x10] sm:$0xff]  ;;  %v142_v32 = vlaneseq }
   0xe   :  { %68 = vst.msk [vmem:[#allocation2] sm:$0xff] %vm67_vm0, %v279_v0  ;;  %91 = vmatpush.msra.mxu0 %v73_v1  ;;  %v71_v3 = vld [vmem:[#allocation5 + $0x8] sm:$0xff]  ;;  %v70_v4 = vld [vmem:[#allocation5] sm:$0xff]  ;;  %v69_v5 = vld [vmem:[#allocation3] sm:$0xff]  ;;  %s280_s13 = smov 1   ;;  %v281_v25 = vmov 1  }
   0xf   :  { %v190_v9 = vld [vmem:[#allocation7] ss:$0 sm:$0xff]  ;;  %v191_v12 = vld [vmem:[%s342_s3] ss:$0 sm:$0xff]  ;;  %v192_v17 = vld [vmem:[%s342_s3 + $0x1] ss:$0 sm:$0xff]  ;;  %188 = vset.pattern.permute.xlu1 %v281_v25  ;;  %189 = vset.pattern.permute.xlu0 %v281_v25 }
  0x10   :  { %92 = vmatpush.msra.mxu0 %v72_v2  ;;  %v193_v20 = vld [vmem:[%s343_s4] ss:$0 sm:$0xff]  ;;  %v143_v33 = vand.u32 127, %v142_v32  ;;  %v282_v34 = vmov -1.0   ;;  %vm170_vm7 = vcmask 15360  }
  0x12   :  { %93 = vmatpush.msra.mxu0 %v71_v3  ;;  %vm144_vm4 = vcmp.eq.s32.totalorder %v143_v33, 0 }
  0x13   :  { %v145_v35 = vsel %vm144_vm4, 1.0, %v282_v34 }
  0x14   :  { %94 = vmatpush.msra.mxu0 %v70_v4 }
  0x15   :  { %178 = vmatmul.msk.f32.vlgmr.msra.gmra.mxu0 %vm67_vm0, %v69_v5  ;;  %v74_v6 = vld [vmem:[#allocation2] sm:$0xff] }
  0x92   :  { %v96_v7 = vpop.f32.mrf.mxu0 }
  0x93   :  { %v99_v8 = vadd.f32 %v96_v7, %v74_v6 }
  0x95   :  { %100 = vst.msk [vmem:[#allocation2] sm:$0xff] %vm67_vm0, %v99_v8 }
  0x9c   :  { %v104_v10 = vld [vmem:[#allocation2] sm:$0xff] }
  0x9d   :  { %v109_v11 = vadd.f32 %v190_v9, %v104_v10 }
  0x9f   :  { %vm110_vm1 = vcmp.ge.f32.partialorder %v109_v11, 0.0  ;;  %v111_v13 = vmul.f32 0.01, %v109_v11 }
  0xa1   :  { %v112_v14 = vsel %vm110_vm1, %v109_v11, %v111_v13 }
  0xa2   :  { %v115_v15 = vmul.f32 %v191_v12, %v112_v14  ;;  %v126_v18 = vmul.f32 %v192_v17, %v112_v14 }
  0xa4   :  { %v116_v16 = vsel %vm67_vm0, %v115_v15, 0.0  ;;  %v127_v19 = vsel %vm67_vm0, %v126_v18, 0.0 }
  0xa5   :  { %117 = vadd.xlane.f32.xlu0 %v116_v16 }
  0xad   :  { %128 = vadd.xlane.f32.xlu0 %v127_v19 }
 0x118   :  { %v118_v21 = vpop.xlane.xlu0 %117 }
 0x119   :  { %v123_v22 = vadd.f32 %v193_v20, %v118_v21 }
 0x11b   :  { %vm131_vm2 = vcmp.ge.f32.partialorder %v123_v22, 0.0  ;;  %v132_v23 = vmul.f32 0.01, %v123_v22 }
 0x11d   :  { %v133_v24 = vsel %vm131_vm2, %v123_v22, %v132_v23 }
 0x11e   :  { %138 = vrot.lane.b32.xlu1 %v133_v24, %s280_s13 }
 0x120   :  { %v129_v26 = vpop.xlane.xlu0 %128 }
 0x121   :  { %v130_v27 = vadd.f32 %v193_v20, %v129_v26 }
 0x123   :  { %v135_v28 = vmul.f32 0.01, %v130_v27  ;;  %vm134_vm3 = vcmp.ge.f32.partialorder %v130_v27, 0.0 }
 0x125   :  { %v136_v30 = vsel %vm134_vm3, %v130_v27, %v135_v28 }
 0x190   :  { %v139_v29 = vpop.permute.xlu1 %138 }
 0x191   :  { %v141_v31 = vsub.f32 %v136_v30, %v139_v29 }
 0x193   :  { %148 = vperm.xlu1 %188, %v141_v31  }
 0x205   :  { %v149_v36 = vpop.permute.xlu1 %148 }
 0x206   :  { %v151_v37 = vmul.f32 %v149_v36, %v145_v35 }
 0x208   :  { %v152_v38 = vmul.f32 1.442695, %v151_v37 }
 0x20a   :  { %194 = vpow2.f32 %v152_v38 }
 0x210   :  { %v195_v39 = vpop.eup %194 }
 0x211   :  { %v154_v40 = vadd.f32 1.0, %v195_v39 }
 0x213   :  { %196 = vrcp.f32 %v154_v40  ;;  %v166_v44 = vand.u32 2147483648, %v154_v40  ;;  %v164_v46 = vand.u32 2147483647, %v154_v40  ;;  %vm160_vm6 = vweird.f32 %v154_v40 }
 0x215   :  { %v167_v48 = vor.u32 1.1754944e-38, %v166_v44  ;;  %vm165_vm9 = vcmp.eq.f32.partialorder %v164_v46, 8.507059e+37 }
 0x219   :  { %v197_v41 = vpop.eup %196 }
 0x21a   :  { %v156_v42 = vmul.f32 %v197_v41, %v154_v40  ;;  %vm161_vm5 = vweird.f32 %v197_v41 }
 0x21b   :  { %vm162_vm8 = vmor %vm160_vm6, %vm161_vm5 }
 0x21c   :  { %v157_v43 = vsub.f32 1.0, %v156_v42 }
 0x21e   :  { %v158_v45 = vmul.f32 %v197_v41, %v157_v43 }
 0x220   :  { %v159_v47 = vadd.f32 %v197_v41, %v158_v45 }
 0x222   :  { %v163_v49 = vsel %vm162_vm8, %v197_v41, %v159_v47 }
 0x223   :  { %v168_v50 = vsel %vm165_vm9, %v167_v48, %v163_v49 }
 0x224   :  { %171 = vst.msk [vmem:[%s344_s5] sm:$0xff] %vm170_vm7, %v168_v50 }
 0x225   :  { %176 = vsyncpa [#allocation4], 1 }
 0x226   :  { %177 = vsyncpa [#allocation6], 1 }

</bundles_post_ra>
